<compile_context>
chip_gen: v7x
topology: tpu7x:2x2x1
jax: 0.10.0
libtpu: 0.0.40
codegen_flags: <defaults>
</compile_context>

<pallas_src>
import functools

import jax
import jax.numpy as jnp
from jax.experimental import pallas as pl
from jax.experimental.pallas import tpu as pltpu


def _focal_loss_kernel(gamma, n_valid, tile_n, x_ref, t_ref, out_ref):
    # x_ref: (1, C, TN) logits, t_ref: (1, 1, TN) int32, out_ref: (1, 1, 1) f32
    g = pl.program_id(1)

    # Fresh (per-b) resident output block: zero the accumulator.
    @pl.when(g == 0)
    def _():
        out_ref[...] = jnp.zeros_like(out_ref)

    x = x_ref[0].astype(jnp.float32)                         # (C, TN)
    t = t_ref[0]                                             # (1, TN) int32
    C, TN = x.shape

    # one-hot of the target class along the (sublane) class axis
    cls_iota = jax.lax.broadcasted_iota(jnp.int32, (C, TN), 0)
    onehot = (cls_iota == t).astype(jnp.float32)             # (C, TN)

    # numerically stable softmax pieces, reduced over the class (sublane) axis
    m = jnp.max(x, axis=0, keepdims=True)                    # (1, TN)
    sh = x - m                                               # (C, TN)
    e = jnp.exp(sh)                                          # (C, TN)
    s = jnp.sum(e, axis=0, keepdims=True)                    # (1, TN)
    sh_t = jnp.sum(sh * onehot, axis=0, keepdims=True)       # (1, TN) shifted target logit
    e_t = jnp.sum(e * onehot, axis=0, keepdims=True)         # (1, TN) exp(sh_t), reused

    ce = jnp.log(s) - sh_t                                   # (1, TN) cross entropy
    y_pred = e_t / s                                         # (1, TN) == exp(-ce), exact
    base = jnp.maximum(1.0 - y_pred, 0.0)                    # clamp tiny negative rounding

    # gamma is a static Python float -> resolved at trace time
    if gamma == 0.0:
        w = jnp.ones_like(base)
    elif gamma == 1.0:
        w = base
    elif gamma == 2.0:
        w = base * base
    else:
        w = jnp.power(base, gamma)
    focal = w * ce                                           # (1, TN)

    # mask padded lanes of the last (remainder) N tile; jnp.where is NaN-safe
    if n_valid % tile_n != 0:
        col = g * tile_n + jax.lax.broadcasted_iota(jnp.int32, (1, TN), 1)
        focal = jnp.where(col < n_valid, focal, 0.0)

    psum = jnp.sum(focal, axis=1, keepdims=True)             # (1, 1)
    out_ref[...] = out_ref[...] + psum.reshape(1, 1, 1)


def _pick_tile_n(n, c, itemsize):
    """Lane-tile size along N.

    Biggest tile that (a) keeps the double-buffered (C, TN) logits stream plus
    the handful of f32 (C, TN) temporaries comfortably inside the scoped-VMEM
    limit on every chip (v5e's 16 MiB default is the binding one), and
    (b) is either a multiple of 128 or the full array extent (always legal).
    Larger tiles amortize the ~0.35 us per-grid-step overhead.
    """
    # ~2 MiB worth of f32 elements per (C, TN) slab; with the input stream
    # double-buffered and ~5 f32 temporaries that is <= ~14 MiB peak.
    max_elems = (2 * 1024 * 1024) // 4
    tn = (max_elems // max(c, 1)) // 128 * 128
    tn = max(128, min(16384, tn))
    if tn >= n:
        return n                       # single full-extent tile along N
    return tn


def focal_loss(logits_bcn, target_bn, gamma=1.0, tile_n=None):
    """logits_bcn: (B, C, N) float (f32 or bf16); target_bn: (B, N) int.

    Returns the scalar focal loss (f32), matching the PyTorch module.
    `tile_n` overrides the auto-chosen lane tile (testing / tuning only).
    """
    B, C, N = logits_bcn.shape
    # free reshape (no transpose, no data movement): class stays on dim 1,
    # N stays on the lane axis for both inputs
    target = target_bn.astype(jnp.int32).reshape(B, 1, N)

    tn = tile_n if tile_n is not None else _pick_tile_n(N, C, logits_bcn.dtype.itemsize)
    grid = (B, pl.cdiv(N, tn))

    partials = pl.pallas_call(
        functools.partial(_focal_loss_kernel, float(gamma), N, tn),
        out_shape=jax.ShapeDtypeStruct((B, 1, 1), jnp.float32),
        grid_spec=pltpu.PrefetchScalarGridSpec(
            num_scalar_prefetch=0,
            grid=grid,
            in_specs=[
                pl.BlockSpec((1, C, tn), lambda b, g: (b, 0, g)),
                pl.BlockSpec((1, 1, tn), lambda b, g: (b, 0, g)),
            ],
            out_specs=pl.BlockSpec((1, 1, 1), lambda b, g: (b, 0, 0)),
        ),
        compiler_params=pltpu.CompilerParams(
            # b axis independent (megacore on v7x); g axis reduces into the
            # resident per-b output block.
            dimension_semantics=("parallel", "arbitrary"),
            vmem_limit_bytes=32 * 1024 * 1024,
        ),
    )(logits_bcn, target)

    # mean over the true global element count B*N (not block-local counts)
    return jnp.sum(partials) / (B * N)


def _focal_loss_ref(logits_bcn, target_bn, gamma=1.0):
    # pure-JAX reference mirroring F.cross_entropy(reduction='none')
    logp = jax.nn.log_softmax(logits_bcn.astype(jnp.float32), axis=1)        # (B, C, N)
    ce = -jnp.take_along_axis(logp, target_bn[:, None, :], axis=1)[:, 0, :]  # (B, N)
    y_pred = jnp.exp(-ce)
    return jnp.mean((1.0 - y_pred) ** gamma * ce)


if __name__ == "__main__":
    key = jax.random.PRNGKey(0)
    k1, k2, k3, k4 = jax.random.split(key, 4)

    # Primary small test, shapes implied by the module: x (B, C, N), y (B, N)
    B, C, N = 2, 4, 16
    logits = jax.random.normal(k1, (B, C, N), dtype=jnp.float32)
    target = jax.random.randint(k2, (B, N), 0, C, dtype=jnp.int32)
    gamma = 1.0

    out = focal_loss(logits, target, gamma=gamma)
    out = jax.block_until_ready(out)
    ref = _focal_loss_ref(logits, target, gamma=gamma)
    assert jnp.allclose(out, ref, atol=1e-5, rtol=1e-4), (out, ref)

    # Secondary test: single big lane tile picked automatically, gamma=2
    B2, C2, N2 = 2, 4, 1300
    logits2 = jax.random.normal(k3, (B2, C2, N2), dtype=jnp.float32)
    target2 = jax.random.randint(k4, (B2, N2), 0, C2, dtype=jnp.int32)

    out2 = focal_loss(logits2, target2, gamma=2.0)
    out2 = jax.block_until_ready(out2)
    ref2 = _focal_loss_ref(logits2, target2, gamma=2.0)
    assert jnp.allclose(out2, ref2, atol=1e-5, rtol=1e-4), (out2, ref2)

    # Third test: forced small tile exercises the multi-step grid along N,
    # the resident-accumulator path, and remainder-lane masking; gamma=1.5
    # exercises the general jnp.power branch.
    out3 = focal_loss(logits2, target2, gamma=1.5, tile_n=512)
    out3 = jax.block_until_ready(out3)
    ref3 = _focal_loss_ref(logits2, target2, gamma=1.5)
    assert jnp.allclose(out3, ref3, atol=1e-5, rtol=1e-4), (out3, ref3)

    print("KERNEL_OK")
</pallas_src>

<mosaic_0001>
module attributes {stable_mosaic.version = 11 : i64} {
  func.func @_focal_loss_kernel(%arg0: i32, %arg1: i32, %arg2: memref<1x4x16xf32, #tpu.memory_space<vmem>>, %arg3: memref<1x1x16xi32, #tpu.memory_space<vmem>>, %arg4: memref<1x1x1xf32, #tpu.memory_space<vmem>>) attributes {dimension_semantics = [#tpu.dimension_semantics<parallel>, #tpu.dimension_semantics<arbitrary>], iteration_bounds = array<i64: 2, 1>, scalar_prefetch = 0 : i64, scratch_operands = 0 : i64, tpu.core_type = #tpu.core_type<tc>, window_params = [{transform_indices = @transform_0, window_bounds = array<i64: 1, 4, 16>}, {transform_indices = @transform_1, window_bounds = array<i64: 1, 1, 16>}, {transform_indices = @transform_2, window_bounds = array<i64: 1, 1, 1>}]} {
    %c0_i32 = arith.constant 0 : i32
    %0 = arith.cmpi eq, %arg1, %c0_i32 : i32
    %1 = arith.extui %0 : i1 to i32
    %c0_i32_0 = arith.constant 0 : i32
    %2 = arith.cmpi ne, %1, %c0_i32_0 : i32
    scf.if %2 {
      %cst_18 = arith.constant 0.000000e+00 : f32
      %39 = vector.broadcast %cst_18 : f32 to vector<1x1x1xf32>
      %c0_19 = arith.constant 0 : index
      %c0_20 = arith.constant 0 : index
      %c0_21 = arith.constant 0 : index
      %40 = vector.load %arg4[%c0_19, %c0_20, %c0_21] : memref<1x1x1xf32, #tpu.memory_space<vmem>>, vector<1x1x1xf32>
      tpu.vector_store %arg4[%c0_19, %c0_20, %c0_21], %39 {strides = array<i32>} : memref<1x1x1xf32, #tpu.memory_space<vmem>>, vector<1x1x1xf32>,
    } else {
    }
    %c0 = arith.constant 0 : index
    %c0_1 = arith.constant 0 : index
    %c0_2 = arith.constant 0 : index
    %3 = vector.load %arg2[%c0, %c0_1, %c0_2] : memref<1x4x16xf32, #tpu.memory_space<vmem>>, vector<1x4x16xf32>
    %4 = vector.shape_cast %3 : vector<1x4x16xf32> to vector<4x16xf32>
    %c0_3 = arith.constant 0 : index
    %c0_4 = arith.constant 0 : index
    %c0_5 = arith.constant 0 : index
    %5 = vector.load %arg3[%c0_3, %c0_4, %c0_5] : memref<1x1x16xi32, #tpu.memory_space<vmem>>, vector<1x1x16xi32>
    %6 = vector.shape_cast %5 : vector<1x1x16xi32> to vector<1x16xi32>
    %7 = tpu.iota {dimensions = array<i32: 0>} : vector<4x16xi32>
    %8 = vector.broadcast %6 : vector<1x16xi32> to vector<4x16xi32>
    %9 = arith.cmpi eq, %7, %8 : vector<4x16xi32>
    %10 = arith.extui %9 : vector<4x16xi1> to vector<4x16xi32>
    %11 = arith.sitofp %10 : vector<4x16xi32> to vector<4x16xf32>
    %cst = arith.constant dense<0xFF800000> : vector<16xf32>
    %12 = vector.multi_reduction <maximumf>, %4, %cst [0] : vector<4x16xf32> to vector<16xf32>
    %13 = vector.shape_cast %12 : vector<16xf32> to vector<1x16xf32>
    %14 = vector.broadcast %13 : vector<1x16xf32> to vector<4x16xf32>
    %15 = arith.subf %4, %14 : vector<4x16xf32>
    %16 = math.exp %15 : vector<4x16xf32>
    %cst_6 = arith.constant dense<0.000000e+00> : vector<16xf32>
    %17 = vector.multi_reduction <add>, %16, %cst_6 [0] : vector<4x16xf32> to vector<16xf32>
    %18 = vector.shape_cast %17 : vector<16xf32> to vector<1x16xf32>
    %19 = arith.mulf %15, %11 : vector<4x16xf32>
    %cst_7 = arith.constant dense<0.000000e+00> : vector<16xf32>
    %20 = vector.multi_reduction <add>, %19, %cst_7 [0] : vector<4x16xf32> to vector<16xf32>
    %21 = vector.shape_cast %20 : vector<16xf32> to vector<1x16xf32>
    %22 = arith.mulf %16, %11 : vector<4x16xf32>
    %cst_8 = arith.constant dense<0.000000e+00> : vector<16xf32>
    %23 = vector.multi_reduction <add>, %22, %cst_8 [0] : vector<4x16xf32> to vector<16xf32>
    %24 = vector.shape_cast %23 : vector<16xf32> to vector<1x16xf32>
    %25 = math.log %18 : vector<1x16xf32>
    %26 = arith.subf %25, %21 : vector<1x16xf32>
    %27 = arith.divf %24, %18 : vector<1x16xf32>
    %cst_9 = arith.constant 1.000000e+00 : f32
    %28 = vector.broadcast %cst_9 : f32 to vector<1x16xf32>
    %29 = arith.subf %28, %27 : vector<1x16xf32>
    %cst_10 = arith.constant 0.000000e+00 : f32
    %30 = vector.broadcast %cst_10 : f32 to vector<1x16xf32>
    %31 = arith.maximumf %29, %30 : vector<1x16xf32>
    %32 = arith.mulf %31, %26 : vector<1x16xf32>
    %cst_11 = arith.constant dense<0.000000e+00> : vector<1xf32>
    %33 = vector.multi_reduction <add>, %32, %cst_11 [1] : vector<1x16xf32> to vector<1xf32>
    %34 = vector.shape_cast %33 : vector<1xf32> to vector<1x1xf32>
    %c0_12 = arith.constant 0 : index
    %c0_13 = arith.constant 0 : index
    %c0_14 = arith.constant 0 : index
    %35 = vector.load %arg4[%c0_12, %c0_13, %c0_14] : memref<1x1x1xf32, #tpu.memory_space<vmem>>, vector<1x1x1xf32>
    %36 = vector.shape_cast %34 : vector<1x1xf32> to vector<1x1x1xf32>
    %37 = arith.addf %35, %36 : vector<1x1x1xf32>
    %c0_15 = arith.constant 0 : index
    %c0_16 = arith.constant 0 : index
    %c0_17 = arith.constant 0 : index
    %38 = vector.load %arg4[%c0_15, %c0_16, %c0_17] : memref<1x1x1xf32, #tpu.memory_space<vmem>>, vector<1x1x1xf32>
    tpu.vector_store %arg4[%c0_15, %c0_16, %c0_17], %37 {strides = array<i32>} : memref<1x1x1xf32, #tpu.memory_space<vmem>>, vector<1x1x1xf32>,
    return
  }
  func.func @transform_0(%arg0: i32, %arg1: i32) -> (i32, i32, i32) {
    %c0_i32 = arith.constant 0 : i32
    %c0_i32_0 = arith.constant 0 : i32
    return %arg0, %c0_i32, %arg1 : i32, i32, i32
  }
  func.func @transform_1(%arg0: i32, %arg1: i32) -> (i32, i32, i32) {
    %c0_i32 = arith.constant 0 : i32
    %c0_i32_0 = arith.constant 0 : i32
    return %arg0, %c0_i32, %arg1 : i32, i32, i32
  }
  func.func @transform_2(%arg0: i32, %arg1: i32) -> (i32, i32, i32) {
    %c0_i32 = arith.constant 0 : i32
    %c0_i32_0 = arith.constant 0 : i32
    %c0_i32_1 = arith.constant 0 : i32
    return %arg0, %c0_i32, %c0_i32_0 : i32, i32, i32
  }
}

</mosaic_0001>

<bundles_post_ra>
// kernel: tpu_custom_call.1
= control target key start
LH: loop header
LB: loop body
LE: loop exit
PB: predicated region body
PF: predicated region fallthrough
CT: control target
= control target key end

     0   :  { %7 = vsyncpa [#allocation3], 0  ;;  %s656_s0 = inlined_call_operand.hbm [shape: f32[2,4,16], index: 0, kind: input, shape index: {}]   ;;  %s657_s1 = inlined_call_operand.vmem [shape: s32[2,1,16], index: 1, kind: input, shape index: {}]   ;;  %s658_s2 = inlined_call_operand.vmem [shape: f32[2,1,1], index: 2, kind: output, shape index: {}]  }
   0x1   :  { %9 = vsyncpa [#allocation3 + $0x1], 0  ;;  %s517_s9 = smov 0   ;;  %s519_s10 = smov 0  }
   0x2   :  { %s521_s11 = smov 0   ;;  %s523_s12 = smov 0  }
   0x3   :  { %s525_s13 = smov 0   ;;  %s527_s14 = smov 0  }
   0x4 LB: > { %s344_s15 = sadd.s32 4294967295, %s498_s14   ;;  %s27_s16 = sadd.s32 1, %s494_s13  ;;  %s498_s14 = sphi %s527_s14, %s15_s14   ;;  %s494_s13 = sphi %s525_s13, %s668_s13   ;;  %s490_s12 = sphi %s523_s12, %s667_s12   ;;  %s486_s11 = sphi %s521_s11, %s666_s11   ;;  %s482_s10 = sphi %s519_s10, %s665_s10   ;;  %s478_s9 = sphi %s517_s9, %s664_s9  }
   0x5   : > { %p29_p0 = scmp.ge.s32.totalorder %s27_s16, 2  ;;  %s36_s17 = sadd.s32 1, %s486_s11 }
   0x6   : > { %p43_p1 = scmp.ne.s32.totalorder %s486_s11, %s482_s10  ;;  %p44_p2 = scmp.eq.s32.totalorder %s498_s14, 0 }
   0x7   : > { %s670_s16 = smov (%p29_p0, %s27_s16), 0  ;;  %p49_p4 = scmp.ne.s32.totalorder %s482_s10, %s478_s9 }
   0x8   : > { %p553_p3 = por %p44_p2, %p43_p1  ;;  %s31_s19 = ssub.s32 %s494_s13, %s670_s16 }
   0x9   : > { %p50_p5 = scmp.eq.s32.totalorder %s344_s15, 0  ;;  %p34_p6 = scmp.eq.s32.totalorder %s31_s19, 0 }
   0xa   : > { %p362_p8 = scmp.lt.s32.totalorder %s498_s14, 2  ;;  %s127_s22 = sand.u32 1, %s486_s11  }
   0xb   : > { %p560_p7 = por %p50_p5, %p49_p4  ;;  %s349_s23 = sshll.u32 %s494_s13, 6 }
   0xc   : > { %s566_s21 = scalar_select %p34_p6, %s486_s11, %s36_s17  }
   0xd   : > { %s348_s24 = sshll.u32 %s127_s22, 2  ;;  %s573_s27 = scalar_lea.hbm %s656_s0, %s349_s23 }
   0xe   : > { %s131_s28 = scalar_lea.vmem [#allocation2], %s348_s24  ;;  %p577_p9 = pnand %p362_p8, %p553_p3 }
   0xf   : > { %s139_s29 = sshll.u32 %s131_s28, 4  ;;  %s128_s3 = scalar_lea.sflag [#allocation3], %s127_s22  ;;  %s581_s29 = int_to_ptr.vmem [resolvable:$true] %s139_s29 }
  0x10   : > { %s418_s4 = scalar_lea.hbm %s573_s27, 64  ;;  %p420_p13 = pneg %p577_p9 }
  0x11   : > { %p419_p12 = scmp.ne.s32.totalorder %s573_s27, %s418_s4  ;;  %s423_s7 = scalar_lea.hbm %s656_s0, 128 }
  0x12   : > { %p424_p2 = scmp.lt.u32.totalorder %s573_s27, %s656_s0  ;;  %p425_p3 = scmp.lt.u32.totalorder %s423_s7, %s418_s4 }
  0x13   : > { %p421_p0 = pnand %p420_p13, %p419_p12  ;;  %p427_p5 = scmp.lt.u32.totalorder %s418_s4, %s573_s27 }
  0x14   : > { %p426_p4 = por %p425_p3, %p424_p2 }
  0x15   : > { %p422_p1 = pneg %p421_p0 }
  0x16   : > { %p428_p6 = por %p427_p5, %p426_p4 }
  0x18   : > { %p429_p8 = pnand %p428_p6, %p422_p1 }
  0x1a   : > { %432 = shalt.err (!%p429_p8)
}
  0x1b   : > { %s433_s15 = scalar_lea.vmem %s581_s29, 64  ;;  %s500_s17 = smov [#allocation2]  }
  0x1c   : > { %p434_p12 = scmp.ne.s32.totalorder %s581_s29, %s433_s15  ;;  %s438_s18 = sshll.u32 %s500_s17, 4  ;;  %s439_s18 = int_to_ptr.vmem [resolvable:$false] %s438_s18 }
  0x1d   : > { %s440_s19 = scalar_lea.vmem %s439_s18, 128  ;;  %p441_p11 = scmp.lt.s32.totalorder %s581_s29, %s439_s18 }
  0x1e   : > { %p436_p0 = pnand %p434_p12, %p420_p13  ;;  %p442_p2 = scmp.lt.s32.totalorder %s440_s19, %s433_s15 }
  0x20   : > { %p437_p10 = pneg %p436_p0  ;;  %p443_p3 = por %p442_p2, %p441_p11 }
  0x22   : > { %p444_p4 = pnand %p443_p3, %p437_p10 }
  0x24   : > { %447 = shalt.err (!%p444_p4)
}
  0x25   : > { %361 = dma.hbm_to_vmem [thread:$0]  (!%p577_p9), %s573_s27, 64, %s581_s29, %s128_s3  }
  0x26   : > { %p662_p1 = scmp.lt.s32.totalorder %s498_s14, 3  ;;  %p663_p5 = scmp.ge.s32.totalorder %s498_s14, 1 }
  0x28   : > { %p154_p13 = pnand %p663_p5, %p662_p1 }
  0x29   : > { %s159_s22 = sand.u32 (!%p154_p13), 1, %s482_s10  }
  0x2a   : > { %157 = sbr.rel (%p154_p13) target bundleno = 259 (0x103), region = 28  ;;  %s351_s23 = sshll.u32 (!%p154_p13), %s159_s22, 2 }
  0x2b   : > { %s160_s24 = scalar_lea.sflag (!%p154_p13), [#allocation3], %s159_s22  ;;  %s163_s25 = scalar_lea.vmem (!%p154_p13), [#allocation2], %s351_s23 }
  0x31   : > { %473 = dma.done.wait (%p560_p7), %s160_s24, 64  }
  0x32   : > { %475 = vsyncadd (%p560_p7), %s160_s24, 4294967232  ;;  %p188_p10 = scmp.lt.s32.totalorder %s490_s12, 1  ;;  %vm201_vm0 = vcmask 0   ;;  %vm214_vm1 = vcmask 125952   ;;  %v501_v0 = vmov 0.0   ;;  %v205_v9 = vlaneseq }
  0x33   : > { %v203_v1 = vld [vmem:[%s163_s25] sm:$0xf]  ;;  %vm256_vm3 = vcmask 130048  }
  0x34   : > { %s672_s12 = smov (!%p188_p10, %s490_s12), 1  ;;  %v215_v2 = vsel %vm214_vm1, %v203_v1, -inf  ;;  %v206_v12 = vshrl.u32 %v205_v9, 7 }
  0x35   : > { %s624_s28 = scalar_lea.vmem %s658_s2, %s672_s12  ;;  %v216_v3 = vrot.slane %v215_v2, 4  ;;  %s193_s30 = scalar_lea.vmem %s657_s1, %s672_s12 }
  0x36   : > { %202 = vst.msk [vmem:[%s624_s28] sm:$0x1] %vm201_vm0, %v501_v0  ;;  %v352_v13 = vld [vmem:[%s193_s30] ss:$0 sm:$0xff] }
  0x37   : > { %v217_v4 = vmax.f32 %v215_v2, %v216_v3  ;;  %vm211_vm2 = vcmp.eq.s32.totalorder %v206_v12, %v352_v13 }
  0x38   : > { %v353_v14 = vsel %vm211_vm2, 1.0, %v501_v0 }
  0x39   : > { %v218_v5 = vrot.slane %v217_v4, 2 }
  0x3b   : > { %v219_v6 = vmax.f32 %v217_v4, %v218_v5 }
  0x3d   : > { %v220_v7 = vrot.slane %v219_v6, 1  ;;  %v260_v48 = vld [vmem:[%s624_s28] sm:$0x1] }
  0x3f   : > { %v221_v8 = vmax.f32 %v219_v6, %v220_v7 }
  0x41   : > { %v222_v10 = vsub.f32 %v203_v1, %v221_v8 }
  0x43   : > { %v223_v11 = vmul.f32 1.442695, %v222_v10  ;;  %v232_v15 = vmul.f32 %v353_v14, %v222_v10 }
  0x45   : > { %412 = vpow2.f32 %v223_v11  ;;  %v233_v18 = vsel %vm214_vm1, %v232_v15, 0.0 }
  0x46   : > { %v234_v23 = vrot.slane %v233_v18, 4 }
  0x48   : > { %v235_v28 = vadd.f32 %v234_v23, %v233_v18 }
  0x4a   : > { %v236_v32 = vrot.slane %v235_v28, 2 }
  0x4c   : > { %v237_v34 = vadd.f32 %v236_v32, %v235_v28 }
  0x4e   : > { %v238_v36 = vrot.slane %v237_v34, 1 }
  0x4f   : > { %v413_v16 = vpop.eup %412 }
  0x50   : > { %v225_v17 = vsel %vm214_vm1, %v413_v16, 0.0  ;;  %v240_v19 = vmul.f32 %v413_v16, %v353_v14  ;;  %v239_v39 = vadd.f32 %v238_v36, %v237_v34 }
  0x51   : > { %v226_v20 = vrot.slane %v225_v17, 4 }
  0x52   : > { %v241_v21 = vsel %vm214_vm1, %v240_v19, 0.0 }
  0x53   : > { %v227_v22 = vadd.f32 %v226_v20, %v225_v17  ;;  %v242_v24 = vrot.slane %v241_v21, 4 }
  0x55   : > { %v228_v25 = vrot.slane %v227_v22, 2  ;;  %v243_v26 = vadd.f32 %v242_v24, %v241_v21 }
  0x57   : > { %v229_v27 = vadd.f32 %v228_v25, %v227_v22  ;;  %v244_v30 = vrot.slane %v243_v26, 2 }
  0x59   : > { %v230_v29 = vrot.slane %v229_v27, 1  ;;  %v245_v33 = vadd.f32 %v244_v30, %v243_v26 }
  0x5b   : > { %v231_v31 = vadd.f32 %v230_v29, %v229_v27  ;;  %v246_v35 = vrot.slane %v245_v33, 1 }
  0x5d   : > { %414 = vlog2.f32 %v231_v31  ;;  %v247_v37 = vadd.f32 %v246_v35, %v245_v33 }
  0x5e   : > { %416 = vrcp.f32 %v231_v31 }
  0x67   : > { %v415_v38 = vpop.eup %414 }
  0x68   : > { %v417_v40 = vpop.eup %416  ;;  %v249_v41 = vmul.f32 0.6931472, %v415_v38 }
  0x69   : > { %v252_v42 = vmul.f32 %v417_v40, %v247_v37 }
  0x6a   : > { %v250_v43 = vsub.f32 %v249_v41, %v239_v39 }
  0x6b   : > { %v253_v44 = vsub.f32 1.0, %v252_v42 }
  0x6d   : > { %v254_v45 = vmax.f32 %v253_v44, 0.0 }
  0x6f   : > { %v255_v46 = vmul.f32 %v254_v45, %v250_v43 }
  0x71   : > { %v257_v47 = vsel %vm256_vm3, %v255_v46, 0.0 }
  0x72   : > { %258 = vadd.xlane.f32.xlu0 %v257_v47 }
  0xff   : > { %v259_v49 = vpop.xlane.xlu0 %258 }
 0x100   : > { %v261_v50 = vadd.f32 %v260_v48, %v259_v49 }
 0x102   : > { %263 = vst.msk [vmem:[%s624_s28] sm:$0x1] %vm201_vm0, %v261_v50 }
 0x103 PF: > { %s15_s14 = sadd.s32 1, %s498_s14   ;;  %s664_s9 = smov %s482_s10 }
 0x104   : > { %p12_p7 = scmp.ge.s32.totalorder %s15_s14, 4   ;;  %s665_s10 = smov %s486_s11 }
 0x105   : > { %s666_s11 = smov %s566_s21  ;;  %s667_s12 = smov %s494_s13 }
 0x106   : > { %s668_s13 = smov %s670_s16  ;;  %14 = sbr.rel (!%p12_p7) target bundleno = 4 (0x4), region = 75 }
 0x10d   :  { %281 = vsyncpa [#allocation3], 1 }
 0x10e   :  { %283 = vsyncpa [#allocation3 + $0x1], 1 }

</bundles_post_ra>
